<compile_context>
chip_gen: v7x
topology: tpu7x:2x2x1
jax: 0.10.0
libtpu: 0.0.40
codegen_flags: <defaults>
</compile_context>

<pallas_src>
import jax
import jax.numpy as jnp
from jax import lax
from jax.experimental import pallas as pl
from jax.experimental.pallas import tpu as pltpu

LANE = 128


def _round_up(x, m):
    return (x + m - 1) // m * m


# --------------------------------------------------------------------------- #
# Fused T-step decoder kernel (single step == T = 1)
# --------------------------------------------------------------------------- #
def decoder_fused_kernel(ids_ref, h0_ref, c0_ref, emb_ref, w_x_ref, w_h_ref,
                         b_g_ref, w_out_ref, b_out_ref,
                         logp_ref, h_out_ref, c_out_ref,
                         h_sc, c_sc):
    """One grid step = one LSTM decode step + linear head + log-softmax.

    ids_ref   : (1, B, 1)    int32 token ids for this step
    h0_ref    : (B, HP)      initial hidden state, lane-padded (pad lanes == 0)
    c0_ref    : (B, HP)      initial cell state,   lane-padded (pad lanes == 0)
    emb_ref   : (V, E)       embedding table (un-padded)
    w_x_ref   : (E, 4*HP)    W_ih^T, each gate in its own 128-lane block
    w_h_ref   : (HP, 4*HP)   W_hh^T, gate-block padded
    b_g_ref   : (1, 4*HP)    b_ih + b_hh, gate-block padded with zeros
    w_out_ref : (HP, OP)     output projection (zeros on pads)
    b_out_ref : (1, OP)      output bias, pad lanes = -1e30
    outputs   : logp (1, B, OP) per step; h/c (B, HP) final state (resident)
    scratch   : h_sc / c_sc (B, HP) recurrent state carried across grid steps
    """
    t = pl.program_id(0)
    B, HP = h_sc.shape
    V = emb_ref.shape[0]

    @pl.when(t == 0)
    def _():
        h_sc[...] = h0_ref[...]
        c_sc[...] = c0_ref[...]

    # ---- embedding gather as a one-hot MXU matmul ---------------------------
    # (no serialized per-row scalar copies; out-of-range ids -> all-zero row,
    #  so there is no possibility of an OOB VMEM read)
    ids = ids_ref[0]                                               # (B, 1) int32
    onehot = (lax.broadcasted_iota(jnp.int32, (B, V), 1) == ids).astype(jnp.float32)
    x = jnp.dot(onehot, emb_ref[...], preferred_element_type=jnp.float32)  # (B, E)
    # Dropout after the embedding is identity in eval mode.

    # ---- gates: x @ W_ih^T + h @ W_hh^T + (b_ih + b_hh)  (no scratch round trip)
    gates = (jnp.dot(x, w_x_ref[...], preferred_element_type=jnp.float32)
             + jnp.dot(h_sc[...], w_h_ref[...], preferred_element_type=jnp.float32)
             + b_g_ref[...])

    # PyTorch gate order (i, f, g, o); each gate in its own 128-lane block.
    i_g = jax.nn.sigmoid(gates[:, 0 * HP:1 * HP])
    f_g = jax.nn.sigmoid(gates[:, 1 * HP:2 * HP])
    g_g = jnp.tanh(gates[:, 2 * HP:3 * HP])
    o_g = jax.nn.sigmoid(gates[:, 3 * HP:4 * HP])

    # Pad lanes: c == 0 and gate pre-activation == 0  =>  pads of c_new/h_new stay 0.
    c_new = f_g * c_sc[...] + i_g * g_g
    h_new = o_g * jnp.tanh(c_new)

    # ---- linear head + log-softmax (lane-dense, OP = 128) -------------------
    logits = (jnp.dot(h_new, w_out_ref[...], preferred_element_type=jnp.float32)
              + b_out_ref[...])
    m = jnp.max(logits, axis=1, keepdims=True)
    lse = jnp.log(jnp.sum(jnp.exp(logits - m), axis=1, keepdims=True)) + m
    logp_ref[0] = logits - lse

    # Carry the recurrent state; outputs are resident (constant block index).
    h_sc[...] = h_new
    c_sc[...] = c_new
    h_out_ref[...] = h_new
    c_out_ref[...] = c_new


# --------------------------------------------------------------------------- #
# One-time parameter preparation (hoisted out of the per-step path)
# --------------------------------------------------------------------------- #
def prepare_decoder_params(params):
    emb = jnp.asarray(params["embedding"], jnp.float32)   # (V, E)
    w_ih = jnp.asarray(params["w_ih"], jnp.float32)        # (4H, E)  torch layout
    w_hh = jnp.asarray(params["w_hh"], jnp.float32)        # (4H, H)
    b_ih = jnp.asarray(params["b_ih"], jnp.float32)        # (4H,)
    b_hh = jnp.asarray(params["b_hh"], jnp.float32)        # (4H,)
    w_out = jnp.asarray(params["w_out"], jnp.float32)      # (O, H)
    b_out = jnp.asarray(params["b_out"], jnp.float32)      # (O,)

    V, E = emb.shape
    H = w_hh.shape[1]
    O = w_out.shape[0]
    HP = _round_up(H, LANE)
    OP = _round_up(O, LANE)

    # W_ih^T / W_hh^T with each gate in its own 128-lane column block; biases pre-summed.
    w_x = jnp.zeros((E, 4 * HP), jnp.float32)
    w_h = jnp.zeros((HP, 4 * HP), jnp.float32)
    b_g = jnp.zeros((1, 4 * HP), jnp.float32)
    b_sum = b_ih + b_hh
    for g in range(4):
        w_x = w_x.at[:, g * HP:g * HP + H].set(w_ih[g * H:(g + 1) * H, :].T)
        w_h = w_h.at[:H, g * HP:g * HP + H].set(w_hh[g * H:(g + 1) * H, :].T)
        b_g = b_g.at[0, g * HP:g * HP + H].set(b_sum[g * H:(g + 1) * H])

    w_out_p = jnp.zeros((HP, OP), jnp.float32).at[:H, :O].set(w_out.T)
    b_out_p = jnp.full((1, OP), -1e30, jnp.float32).at[0, :O].set(b_out)

    return dict(emb=emb, w_x=w_x, w_h=w_h, b_g=b_g, w_out=w_out_p, b_out=b_out_p,
                E=E, H=H, O=O, HP=HP, OP=OP, V=V)


# --------------------------------------------------------------------------- #
# Wrappers
# --------------------------------------------------------------------------- #
def decoder_decode_padded(ids_seq, h_pad, c_pad, prep):
    """Fused T-step (teacher-forced) decode in ONE pallas_call.

    ids_seq : int32 (T, B) token ids per step
    h_pad   : f32 (B, HP)  (pad lanes must be zero)
    c_pad   : f32 (B, HP)  (pad lanes must be zero)
    returns (logp_pad (T, B, OP), h_pad_new (B, HP), c_pad_new (B, HP))
    """
    T, B = ids_seq.shape
    E, HP, OP, V = prep["E"], prep["HP"], prep["OP"], prep["V"]
    H4 = 4 * HP

    const2 = lambda t: (0, 0)   # weights / state: fetched once, stay VMEM-resident

    grid_spec = pltpu.PrefetchScalarGridSpec(
        num_scalar_prefetch=0,
        grid=(T,),
        in_specs=[
            pl.BlockSpec((1, B, 1), lambda t: (t, 0, 0)),   # ids (per step)
            pl.BlockSpec((B, HP), const2),                  # h0
            pl.BlockSpec((B, HP), const2),                  # c0
            pl.BlockSpec((V, E), const2),                   # embedding table
            pl.BlockSpec((E, H4), const2),                  # W_ih^T (gate blocks)
            pl.BlockSpec((HP, H4), const2),                 # W_hh^T (gate blocks)
            pl.BlockSpec((1, H4), const2),                  # b_ih + b_hh
            pl.BlockSpec((HP, OP), const2),                 # W_out^T
            pl.BlockSpec((1, OP), const2),                  # b_out
        ],
        out_specs=(
            pl.BlockSpec((1, B, OP), lambda t: (t, 0, 0)),  # log-probs per step
            pl.BlockSpec((B, HP), const2),                  # final h (resident)
            pl.BlockSpec((B, HP), const2),                  # final c (resident)
        ),
        scratch_shapes=[pltpu.VMEM((B, HP), jnp.float32),   # h state carry
                        pltpu.VMEM((B, HP), jnp.float32)],  # c state carry
    )

    weight_bytes = 4 * (V * E + E * H4 + HP * H4 + H4 + HP * OP + OP)
    cost = pl.CostEstimate(
        flops=int(T * (2 * B * V * E + 2 * B * E * H4 + 2 * B * HP * H4
                       + 2 * B * HP * OP + 12 * B * HP)),
        transcendentals=int(T * B * (5 * HP + OP + 1)),
        bytes_accessed=int(weight_bytes + T * B * 4 + T * B * OP * 4 + 4 * B * HP * 4),
    )

    return pl.pallas_call(
        decoder_fused_kernel,
        grid_spec=grid_spec,
        out_shape=(
            jax.ShapeDtypeStruct((T, B, OP), jnp.float32),
            jax.ShapeDtypeStruct((B, HP), jnp.float32),
            jax.ShapeDtypeStruct((B, HP), jnp.float32),
        ),
        input_output_aliases={1: 1, 2: 2},   # h_pad -> h_out, c_pad -> c_out
        compiler_params=pltpu.CompilerParams(
            dimension_semantics=("arbitrary",)),
        cost_estimate=cost,
    )(ids_seq.reshape(T, B, 1).astype(jnp.int32), h_pad, c_pad,
      prep["emb"], prep["w_x"], prep["w_h"], prep["b_g"],
      prep["w_out"], prep["b_out"])


def decoder_decode(ids_seq, hidden, cell, prep):
    """Teacher-forced multi-step decode (module applied T times, one kernel launch)."""
    H, O, HP = prep["H"], prep["O"], prep["HP"]
    T, B = ids_seq.shape
    h_pad = jnp.zeros((B, HP), jnp.float32).at[:, :H].set(hidden[0])
    c_pad = jnp.zeros((B, HP), jnp.float32).at[:, :H].set(cell[0])
    logp_p, h_p, c_p = decoder_decode_padded(ids_seq.astype(jnp.int32), h_pad, c_pad, prep)
    return logp_p[:, :, :O], h_p[None, :, :H], c_p[None, :, :H]


def decoder_forward(decoder_input, hidden, cell, prep):
    """Module-faithful interface (mirrors Decoder.forward, eval mode): a single step.

    decoder_input : int (B,)   previous token ids
    hidden, cell  : f32 (1, B, H)
    returns (log_probs (B, O), hidden (1, B, H), cell (1, B, H))
    """
    H, O, HP = prep["H"], prep["O"], prep["HP"]
    B = decoder_input.shape[0]
    h_pad = jnp.zeros((B, HP), jnp.float32).at[:, :H].set(hidden[0])
    c_pad = jnp.zeros((B, HP), jnp.float32).at[:, :H].set(cell[0])
    logp_p, h_p, c_p = decoder_decode_padded(
        decoder_input.astype(jnp.int32)[None, :], h_pad, c_pad, prep)
    return logp_p[0, :, :O], h_p[None, :, :H], c_p[None, :, :H]


# --------------------------------------------------------------------------- #
# Pure-JAX references
# --------------------------------------------------------------------------- #
def decoder_forward_ref(decoder_input, hidden, cell, params):
    x = jnp.take(params["embedding"], decoder_input, axis=0)
    h0, c0 = hidden[0], cell[0]
    H = h0.shape[-1]
    gates = x @ params["w_ih"].T + params["b_ih"] + h0 @ params["w_hh"].T + params["b_hh"]
    i_g = jax.nn.sigmoid(gates[:, 0 * H:1 * H])
    f_g = jax.nn.sigmoid(gates[:, 1 * H:2 * H])
    g_g = jnp.tanh(gates[:, 2 * H:3 * H])
    o_g = jax.nn.sigmoid(gates[:, 3 * H:4 * H])
    c_new = f_g * c0 + i_g * g_g
    h_new = o_g * jnp.tanh(c_new)
    logits = h_new @ params["w_out"].T + params["b_out"]
    logp = jax.nn.log_softmax(logits, axis=1)
    return logp, h_new[None], c_new[None]


def decoder_decode_ref(ids_seq, hidden, cell, params):
    outs = []
    h, c = hidden, cell
    for t in range(ids_seq.shape[0]):
        logp, h, c = decoder_forward_ref(ids_seq[t], h, c, params)
        outs.append(logp)
    return jnp.stack(outs, axis=0), h, c


# --------------------------------------------------------------------------- #
# Test
# --------------------------------------------------------------------------- #
if __name__ == "__main__":
    INPUT_SIZE = 50      # input vocabulary
    HIDDEN_SIZE = 32
    OUTPUT_SIZE = 40     # output vocabulary
    EMBEDDING_DIM = 16
    BATCH = 8
    T_STEPS = 6

    key = jax.random.PRNGKey(0)
    ks = jax.random.split(key, 11)
    kinit = 1.0 / jnp.sqrt(HIDDEN_SIZE)

    params = {
        "embedding": jax.random.normal(ks[0], (INPUT_SIZE, EMBEDDING_DIM), jnp.float32),
        "w_ih": jax.random.uniform(ks[1], (4 * HIDDEN_SIZE, EMBEDDING_DIM), jnp.float32, -kinit, kinit),
        "w_hh": jax.random.uniform(ks[2], (4 * HIDDEN_SIZE, HIDDEN_SIZE), jnp.float32, -kinit, kinit),
        "b_ih": jax.random.uniform(ks[3], (4 * HIDDEN_SIZE,), jnp.float32, -kinit, kinit),
        "b_hh": jax.random.uniform(ks[4], (4 * HIDDEN_SIZE,), jnp.float32, -kinit, kinit),
        "w_out": jax.random.uniform(ks[5], (OUTPUT_SIZE, HIDDEN_SIZE), jnp.float32, -kinit, kinit),
        "b_out": jax.random.uniform(ks[6], (OUTPUT_SIZE,), jnp.float32, -kinit, kinit),
    }

    decoder_input = jax.random.randint(ks[7], (BATCH,), 0, INPUT_SIZE, dtype=jnp.int32)
    hidden = jax.random.normal(ks[8], (1, BATCH, HIDDEN_SIZE), jnp.float32)
    cell = jax.random.normal(ks[9], (1, BATCH, HIDDEN_SIZE), jnp.float32)
    ids_seq = jax.random.randint(ks[10], (T_STEPS, BATCH), 0, INPUT_SIZE, dtype=jnp.int32)

    # One-time weight preparation (hoisted out of the per-step path).
    prep = prepare_decoder_params(params)
    jax.block_until_ready(prep)

    # ---- single decode step (module-faithful interface) ----------------------
    out, h_new, c_new = decoder_forward(decoder_input, hidden, cell, prep)
    jax.block_until_ready((out, h_new, c_new))

    ref_out, ref_h, ref_c = decoder_forward_ref(decoder_input, hidden, cell, params)
    assert jnp.allclose(out, ref_out, atol=1e-4, rtol=1e-4)
    assert jnp.allclose(h_new, ref_h, atol=1e-4, rtol=1e-4)
    assert jnp.allclose(c_new, ref_c, atol=1e-4, rtol=1e-4)

    # ---- fused T-step decode (one pallas_call, weights VMEM-resident) -------
    logp_seq, h_T, c_T = decoder_decode(ids_seq, hidden, cell, prep)
    jax.block_until_ready((logp_seq, h_T, c_T))

    ref_seq, ref_hT, ref_cT = decoder_decode_ref(ids_seq, hidden, cell, params)
    assert jnp.allclose(logp_seq, ref_seq, atol=2e-4, rtol=2e-4)
    assert jnp.allclose(h_T, ref_hT, atol=2e-4, rtol=2e-4)
    assert jnp.allclose(c_T, ref_cT, atol=2e-4, rtol=2e-4)

    print("KERNEL_OK")
</pallas_src>

<mosaic_0001>
module attributes {stable_mosaic.version = 11 : i64} {
  func.func @decoder_fused_kernel(%arg0: i32, %arg1: memref<1x8x1xi32, #tpu.memory_space<vmem>>, %arg2: memref<8x128xf32, #tpu.memory_space<vmem>>, %arg3: memref<8x128xf32, #tpu.memory_space<vmem>>, %arg4: memref<50x16xf32, #tpu.memory_space<vmem>>, %arg5: memref<16x512xf32, #tpu.memory_space<vmem>>, %arg6: memref<128x512xf32, #tpu.memory_space<vmem>>, %arg7: memref<1x512xf32, #tpu.memory_space<vmem>>, %arg8: memref<128x128xf32, #tpu.memory_space<vmem>>, %arg9: memref<1x128xf32, #tpu.memory_space<vmem>>, %arg10: memref<1x8x128xf32, #tpu.memory_space<vmem>>, %arg11: memref<8x128xf32, #tpu.memory_space<vmem>>, %arg12: memref<8x128xf32, #tpu.memory_space<vmem>>, %arg13: memref<8x128xf32, #tpu.memory_space<vmem>>, %arg14: memref<8x128xf32, #tpu.memory_space<vmem>>) attributes {dimension_semantics = [#tpu.dimension_semantics<arbitrary>], iteration_bounds = array<i64: 1>, scalar_prefetch = 0 : i64, scratch_operands = 2 : i64, tpu.core_type = #tpu.core_type<tc>, window_params = [{transform_indices = @transform_0, window_bounds = array<i64: 1, 8, 1>}, {pipeline_mode = #tpu.pipeline_mode<synchronous>, transform_indices = @transform_1, window_bounds = array<i64: 8, 128>}, {pipeline_mode = #tpu.pipeline_mode<synchronous>, transform_indices = @transform_2, window_bounds = array<i64: 8, 128>}, {pipeline_mode = #tpu.pipeline_mode<synchronous>, transform_indices = @transform_3, window_bounds = array<i64: 50, 16>}, {pipeline_mode = #tpu.pipeline_mode<synchronous>, transform_indices = @transform_4, window_bounds = array<i64: 16, 512>}, {pipeline_mode = #tpu.pipeline_mode<synchronous>, transform_indices = @transform_5, window_bounds = array<i64: 128, 512>}, {pipeline_mode = #tpu.pipeline_mode<synchronous>, transform_indices = @transform_6, window_bounds = array<i64: 1, 512>}, {pipeline_mode = #tpu.pipeline_mode<synchronous>, transform_indices = @transform_7, window_bounds = array<i64: 128, 128>}, {pipeline_mode = #tpu.pipeline_mode<synchronous>, transform_indices = @transform_8, window_bounds = array<i64: 1, 128>}, {transform_indices = @transform_9, window_bounds = array<i64: 1, 8, 128>}, {pipeline_mode = #tpu.pipeline_mode<synchronous>, transform_indices = @transform_10, window_bounds = array<i64: 8, 128>}, {pipeline_mode = #tpu.pipeline_mode<synchronous>, transform_indices = @transform_11, window_bounds = array<i64: 8, 128>}]} {
    %c0_i32 = arith.constant 0 : i32
    %0 = arith.cmpi eq, %arg0, %c0_i32 : i32
    %1 = arith.extui %0 : i1 to i32
    %c0_i32_0 = arith.constant 0 : i32
    %2 = arith.cmpi ne, %1, %c0_i32_0 : i32
    scf.if %2 {
      %c0_38 = arith.constant 0 : index
      %c0_39 = arith.constant 0 : index
      %70 = vector.load %arg2[%c0_38, %c0_39] : memref<8x128xf32, #tpu.memory_space<vmem>>, vector<8x128xf32>
      %c0_40 = arith.constant 0 : index
      %c0_41 = arith.constant 0 : index
      %71 = vector.load %arg13[%c0_40, %c0_41] : memref<8x128xf32, #tpu.memory_space<vmem>>, vector<8x128xf32>
      tpu.vector_store %arg13[%c0_40, %c0_41], %70 {strides = array<i32>} : memref<8x128xf32, #tpu.memory_space<vmem>>, vector<8x128xf32>,
      %c0_42 = arith.constant 0 : index
      %c0_43 = arith.constant 0 : index
      %72 = vector.load %arg3[%c0_42, %c0_43] : memref<8x128xf32, #tpu.memory_space<vmem>>, vector<8x128xf32>
      %c0_44 = arith.constant 0 : index
      %c0_45 = arith.constant 0 : index
      %73 = vector.load %arg14[%c0_44, %c0_45] : memref<8x128xf32, #tpu.memory_space<vmem>>, vector<8x128xf32>
      tpu.vector_store %arg14[%c0_44, %c0_45], %72 {strides = array<i32>} : memref<8x128xf32, #tpu.memory_space<vmem>>, vector<8x128xf32>,
    } else {
    }
    %c0 = arith.constant 0 : index
    %c0_1 = arith.constant 0 : index
    %c0_2 = arith.constant 0 : index
    %3 = vector.load %arg1[%c0, %c0_1, %c0_2] : memref<1x8x1xi32, #tpu.memory_space<vmem>>, vector<1x8x1xi32>
    %4 = vector.shape_cast %3 : vector<1x8x1xi32> to vector<8x1xi32>
    %5 = tpu.iota {dimensions = array<i32: 1>} : vector<8x50xi32>
    %6 = vector.broadcast %4 : vector<8x1xi32> to vector<8x50xi32>
    %7 = arith.cmpi eq, %5, %6 : vector<8x50xi32>
    %8 = arith.extui %7 : vector<8x50xi1> to vector<8x50xi32>
    %9 = arith.sitofp %8 : vector<8x50xi32> to vector<8x50xf32>
    %c0_3 = arith.constant 0 : index
    %c0_4 = arith.constant 0 : index
    %10 = vector.load %arg4[%c0_3, %c0_4] : memref<50x16xf32, #tpu.memory_space<vmem>>, vector<50x16xf32>
    %cst = arith.constant dense<0.000000e+00> : vector<8x16xf32>
    %11 = tpu.matmul %9, %10, %cst {dimension_numbers = #tpu.dot_dimension_numbers<[1], [0], [0], [1], [0, 0, 1, 1], [], []>} : vector<8x50xf32>, vector<50x16xf32>, vector<8x16xf32> -> vector<8x16xf32>
    %c0_5 = arith.constant 0 : index
    %c0_6 = arith.constant 0 : index
    %12 = vector.load %arg5[%c0_5, %c0_6] : memref<16x512xf32, #tpu.memory_space<vmem>>, vector<16x512xf32>
    %cst_7 = arith.constant dense<0.000000e+00> : vector<8x512xf32>
    %13 = tpu.matmul %11, %12, %cst_7 {dimension_numbers = #tpu.dot_dimension_numbers<[1], [0], [0], [1], [0, 0, 1, 1], [], []>} : vector<8x16xf32>, vector<16x512xf32>, vector<8x512xf32> -> vector<8x512xf32>
    %c0_8 = arith.constant 0 : index
    %c0_9 = arith.constant 0 : index
    %14 = vector.load %arg13[%c0_8, %c0_9] : memref<8x128xf32, #tpu.memory_space<vmem>>, vector<8x128xf32>
    %c0_10 = arith.constant 0 : index
    %c0_11 = arith.constant 0 : index
    %15 = vector.load %arg6[%c0_10, %c0_11] : memref<128x512xf32, #tpu.memory_space<vmem>>, vector<128x512xf32>
    %cst_12 = arith.constant dense<0.000000e+00> : vector<8x512xf32>
    %16 = tpu.matmul %14, %15, %cst_12 {dimension_numbers = #tpu.dot_dimension_numbers<[1], [0], [0], [1], [0, 0, 1, 1], [], []>} : vector<8x128xf32>, vector<128x512xf32>, vector<8x512xf32> -> vector<8x512xf32>
    %17 = arith.addf %13, %16 : vector<8x512xf32>
    %c0_13 = arith.constant 0 : index
    %c0_14 = arith.constant 0 : index
    %18 = vector.load %arg7[%c0_13, %c0_14] : memref<1x512xf32, #tpu.memory_space<vmem>>, vector<1x512xf32>
    %19 = vector.broadcast %18 : vector<1x512xf32> to vector<8x512xf32>
    %20 = arith.addf %17, %19 : vector<8x512xf32>
    %21 = vector.extract_strided_slice %20 {offsets = [0, 0], sizes = [8, 128], strides = [1, 1]} : vector<8x512xf32> to vector<8x128xf32>
    %22 = arith.negf %21 : vector<8x128xf32>
    %23 = math.exp %22 : vector<8x128xf32>
    %cst_15 = arith.constant 1.000000e+00 : f32
    %24 = vector.broadcast %cst_15 : f32 to vector<8x128xf32>
    %25 = arith.addf %24, %23 : vector<8x128xf32>
    %26 = arith.divf %24, %25 : vector<8x128xf32>
    %27 = vector.extract_strided_slice %20 {offsets = [0, 128], sizes = [8, 128], strides = [1, 1]} : vector<8x512xf32> to vector<8x128xf32>
    %28 = arith.negf %27 : vector<8x128xf32>
    %29 = math.exp %28 : vector<8x128xf32>
    %cst_16 = arith.constant 1.000000e+00 : f32
    %30 = vector.broadcast %cst_16 : f32 to vector<8x128xf32>
    %31 = arith.addf %30, %29 : vector<8x128xf32>
    %32 = arith.divf %30, %31 : vector<8x128xf32>
    %33 = vector.extract_strided_slice %20 {offsets = [0, 256], sizes = [8, 128], strides = [1, 1]} : vector<8x512xf32> to vector<8x128xf32>
    %34 = math.tanh %33 : vector<8x128xf32>
    %35 = vector.extract_strided_slice %20 {offsets = [0, 384], sizes = [8, 128], strides = [1, 1]} : vector<8x512xf32> to vector<8x128xf32>
    %36 = arith.negf %35 : vector<8x128xf32>
    %37 = math.exp %36 : vector<8x128xf32>
    %cst_17 = arith.constant 1.000000e+00 : f32
    %38 = vector.broadcast %cst_17 : f32 to vector<8x128xf32>
    %39 = arith.addf %38, %37 : vector<8x128xf32>
    %40 = arith.divf %38, %39 : vector<8x128xf32>
    %c0_18 = arith.constant 0 : index
    %c0_19 = arith.constant 0 : index
    %41 = vector.load %arg14[%c0_18, %c0_19] : memref<8x128xf32, #tpu.memory_space<vmem>>, vector<8x128xf32>
    %42 = arith.mulf %32, %41 : vector<8x128xf32>
    %43 = arith.mulf %26, %34 : vector<8x128xf32>
    %44 = arith.addf %42, %43 : vector<8x128xf32>
    %45 = math.tanh %44 : vector<8x128xf32>
    %46 = arith.mulf %40, %45 : vector<8x128xf32>
    %c0_20 = arith.constant 0 : index
    %c0_21 = arith.constant 0 : index
    %47 = vector.load %arg8[%c0_20, %c0_21] : memref<128x128xf32, #tpu.memory_space<vmem>>, vector<128x128xf32>
    %cst_22 = arith.constant dense<0.000000e+00> : vector<8x128xf32>
    %48 = tpu.matmul %46, %47, %cst_22 {dimension_numbers = #tpu.dot_dimension_numbers<[1], [0], [0], [1], [0, 0, 1, 1], [], []>} : vector<8x128xf32>, vector<128x128xf32>, vector<8x128xf32> -> vector<8x128xf32>
    %c0_23 = arith.constant 0 : index
    %c0_24 = arith.constant 0 : index
    %49 = vector.load %arg9[%c0_23, %c0_24] : memref<1x128xf32, #tpu.memory_space<vmem>>, vector<1x128xf32>
    %50 = vector.broadcast %49 : vector<1x128xf32> to vector<8x128xf32>
    %51 = arith.addf %48, %50 : vector<8x128xf32>
    %cst_25 = arith.constant dense<0xFF800000> : vector<8xf32>
    %52 = vector.multi_reduction <maximumf>, %51, %cst_25 [1] : vector<8x128xf32> to vector<8xf32>
    %53 = vector.shape_cast %52 : vector<8xf32> to vector<8x1xf32>
    %54 = vector.broadcast %53 : vector<8x1xf32> to vector<8x128xf32>
    %55 = arith.subf %51, %54 : vector<8x128xf32>
    %56 = math.exp %55 : vector<8x128xf32>
    %cst_26 = arith.constant dense<0.000000e+00> : vector<8xf32>
    %57 = vector.multi_reduction <add>, %56, %cst_26 [1] : vector<8x128xf32> to vector<8xf32>
    %58 = vector.shape_cast %57 : vector<8xf32> to vector<8x1xf32>
    %59 = math.log %58 : vector<8x1xf32>
    %60 = arith.addf %59, %53 : vector<8x1xf32>
    %61 = vector.broadcast %60 : vector<8x1xf32> to vector<8x128xf32>
    %62 = arith.subf %51, %61 : vector<8x128xf32>
    %c0_27 = arith.constant 0 : index
    %c0_28 = arith.constant 0 : index
    %c0_29 = arith.constant 0 : index
    %63 = vector.load %arg10[%c0_27, %c0_28, %c0_29] : memref<1x8x128xf32, #tpu.memory_space<vmem>>, vector<1x8x128xf32>
    %64 = vector.shape_cast %63 : vector<1x8x128xf32> to vector<8x128xf32>
    %65 = vector.shape_cast %62 : vector<8x128xf32> to vector<1x8x128xf32>
    tpu.vector_store %arg10[%c0_27, %c0_28, %c0_29], %65 {strides = array<i32>} : memref<1x8x128xf32, #tpu.memory_space<vmem>>, vector<1x8x128xf32>,
    %c0_30 = arith.constant 0 : index
    %c0_31 = arith.constant 0 : index
    %66 = vector.load %arg13[%c0_30, %c0_31] : memref<8x128xf32, #tpu.memory_space<vmem>>, vector<8x128xf32>
    tpu.vector_store %arg13[%c0_30, %c0_31], %46 {strides = array<i32>} : memref<8x128xf32, #tpu.memory_space<vmem>>, vector<8x128xf32>,
    %c0_32 = arith.constant 0 : index
    %c0_33 = arith.constant 0 : index
    %67 = vector.load %arg14[%c0_32, %c0_33] : memref<8x128xf32, #tpu.memory_space<vmem>>, vector<8x128xf32>
    tpu.vector_store %arg14[%c0_32, %c0_33], %44 {strides = array<i32>} : memref<8x128xf32, #tpu.memory_space<vmem>>, vector<8x128xf32>,
    %c0_34 = arith.constant 0 : index
    %c0_35 = arith.constant 0 : index
    %68 = vector.load %arg11[%c0_34, %c0_35] : memref<8x128xf32, #tpu.memory_space<vmem>>, vector<8x128xf32>
    tpu.vector_store %arg11[%c0_34, %c0_35], %46 {strides = array<i32>} : memref<8x128xf32, #tpu.memory_space<vmem>>, vector<8x128xf32>,
    %c0_36 = arith.constant 0 : index
    %c0_37 = arith.constant 0 : index
    %69 = vector.load %arg12[%c0_36, %c0_37] : memref<8x128xf32, #tpu.memory_space<vmem>>, vector<8x128xf32>
    tpu.vector_store %arg12[%c0_36, %c0_37], %44 {strides = array<i32>} : memref<8x128xf32, #tpu.memory_space<vmem>>, vector<8x128xf32>,
    return
  }
  func.func @transform_0(%arg0: i32) -> (i32, i32, i32) {
    %c0_i32 = arith.constant 0 : i32
    %c0_i32_0 = arith.constant 0 : i32
    %c0_i32_1 = arith.constant 0 : i32
    return %arg0, %c0_i32, %c0_i32_0 : i32, i32, i32
  }
  func.func @transform_1(%arg0: i32) -> (i32, i32) {
    %c0_i32 = arith.constant 0 : i32
    %c0_i32_0 = arith.constant 0 : i32
    %c0_i32_1 = arith.constant 0 : i32
    return %c0_i32, %c0_i32_0 : i32, i32
  }
  func.func @transform_2(%arg0: i32) -> (i32, i32) {
    %c0_i32 = arith.constant 0 : i32
    %c0_i32_0 = arith.constant 0 : i32
    %c0_i32_1 = arith.constant 0 : i32
    return %c0_i32, %c0_i32_0 : i32, i32
  }
  func.func @transform_3(%arg0: i32) -> (i32, i32) {
    %c0_i32 = arith.constant 0 : i32
    %c0_i32_0 = arith.constant 0 : i32
    %c0_i32_1 = arith.constant 0 : i32
    return %c0_i32, %c0_i32_0 : i32, i32
  }
  func.func @transform_4(%arg0: i32) -> (i32, i32) {
    %c0_i32 = arith.constant 0 : i32
    %c0_i32_0 = arith.constant 0 : i32
    %c0_i32_1 = arith.constant 0 : i32
    return %c0_i32, %c0_i32_0 : i32, i32
  }
  func.func @transform_5(%arg0: i32) -> (i32, i32) {
    %c0_i32 = arith.constant 0 : i32
    %c0_i32_0 = arith.constant 0 : i32
    %c0_i32_1 = arith.constant 0 : i32
    return %c0_i32, %c0_i32_0 : i32, i32
  }
  func.func @transform_6(%arg0: i32) -> (i32, i32) {
    %c0_i32 = arith.constant 0 : i32
    %c0_i32_0 = arith.constant 0 : i32
    %c0_i32_1 = arith.constant 0 : i32
    return %c0_i32, %c0_i32_0 : i32, i32
  }
  func.func @transform_7(%arg0: i32) -> (i32, i32) {
    %c0_i32 = arith.constant 0 : i32
    %c0_i32_0 = arith.constant 0 : i32
    %c0_i32_1 = arith.constant 0 : i32
    return %c0_i32, %c0_i32_0 : i32, i32
  }
  func.func @transform_8(%arg0: i32) -> (i32, i32) {
    %c0_i32 = arith.constant 0 : i32
    %c0_i32_0 = arith.constant 0 : i32
    %c0_i32_1 = arith.constant 0 : i32
    return %c0_i32, %c0_i32_0 : i32, i32
  }
  func.func @transform_9(%arg0: i32) -> (i32, i32, i32) {
    %c0_i32 = arith.constant 0 : i32
    %c0_i32_0 = arith.constant 0 : i32
    %c0_i32_1 = arith.constant 0 : i32
    return %arg0, %c0_i32, %c0_i32_0 : i32, i32, i32
  }
  func.func @transform_10(%arg0: i32) -> (i32, i32) {
    %c0_i32 = arith.constant 0 : i32
    %c0_i32_0 = arith.constant 0 : i32
    %c0_i32_1 = arith.constant 0 : i32
    return %c0_i32, %c0_i32_0 : i32, i32
  }
  func.func @transform_11(%arg0: i32) -> (i32, i32) {
    %c0_i32 = arith.constant 0 : i32
    %c0_i32_0 = arith.constant 0 : i32
    %c0_i32_1 = arith.constant 0 : i32
    return %c0_i32, %c0_i32_0 : i32, i32
  }
}

</mosaic_0001>

<bundles_post_ra>
// kernel: tpu_custom_call.1
= control target key start
LH: loop header
LB: loop body
LE: loop exit
PB: predicated region body
PF: predicated region fallthrough
CT: control target
= control target key end

     0   :  { %17 = vsyncpa [#allocation5], 0  ;;  %s1390_s0 = inlined_call_operand.vmem [shape: s32[1,8,1], index: 0, kind: input, shape index: {}]   ;;  %s1391_s1 = inlined_call_operand.hbm [shape: f32[8,128], index: 1, kind: input, shape index: {}, may-alias: {1,10}]   ;;  %s1392_s2 = inlined_call_operand.hbm [shape: f32[8,128], index: 2, kind: input, shape index: {}, may-alias: {2,11}]   ;;  %s1393_s3 = inlined_call_operand.vmem [shape: f32[50,16], index: 3, kind: input, shape index: {}]   ;;  %s1394_s4 = inlined_call_operand.vmem [shape: f32[16,512], index: 4, kind: input, shape index: {}]   ;;  %s1395_s5 = inlined_call_operand.hbm [shape: f32[128,512], index: 5, kind: input, shape index: {}]   ;;  %s1396_s6 = inlined_call_operand.vmem [shape: f32[1,512], index: 6, kind: input, shape index: {}]   ;;  %s1397_s7 = inlined_call_operand.hbm [shape: f32[128,128], index: 7, kind: input, shape index: {}]   ;;  %s1398_s8 = inlined_call_operand.vmem [shape: f32[1,128], index: 8, kind: input, shape index: {}]   ;;  %s1399_s9 = inlined_call_operand.hbm [shape: f32[1,8,128], index: 9, kind: output, shape index: {0}]   ;;  %s1400_s10 = inlined_call_operand.hbm [shape: f32[8,128], index: 10, kind: output, shape index: {1}, may-alias: {1,10}]   ;;  %s1401_s11 = inlined_call_operand.hbm [shape: f32[8,128], index: 11, kind: output, shape index: {2}, may-alias: {2,11}]  }
   0x1   :  { %18 = vsyncpa [#allocation8], 0 }
   0x2   :  { %19 = vsyncpa [#allocation11], 0 }
   0x3   :  { %20 = vsyncpa [#allocation6], 0 }
   0x4   :  { %21 = vsyncpa [#allocation14], 0  ;;  %s1150_s17 = smov [#allocation7]   ;;  %s1151_s19 = smov [#allocation4]  }
   0x5   :  { %s40_s18 = sshll.u32 %s1150_s17, 4  ;;  %s30_s20 = sshll.u32 %s1151_s19, 4  ;;  %s41_s18 = int_to_ptr.vmem [resolvable:$true] %s40_s18  ;;  %s31_s20 = int_to_ptr.vmem [resolvable:$true] %s30_s20 }
   0x6   :  { %s986_s23 = scalar_lea.hbm %s1392_s2, 128 }
   0x7   :  { %p987_p0 = scmp.ne.s32.totalorder %s1392_s2, %s986_s23  ;;  %p990_p1 = scmp.lt.u32.totalorder %s986_s23, %s1392_s2 }
   0x9   :  { %p992_p2 = pnand %p990_p1, %p987_p0 }
   0xb   :  { %995 = shalt.err (!%p992_p2)
}
   0xc   :  { %s996_s28 = scalar_lea.vmem %s41_s18, 128  ;;  %p1001_p4 = scmp.lt.s32.totalorder %s41_s18, %s41_s18 }
   0xd   :  { %p997_p3 = scmp.ne.s32.totalorder %s41_s18, %s996_s28  ;;  %p1002_p5 = scmp.lt.s32.totalorder %s996_s28, %s996_s28 }
   0xf   :  { %p1003_p6 = por %p1002_p5, %p1001_p4 }
  0x11   :  { %p1004_p7 = pnand %p1003_p6, %p997_p3 }
  0x13   :  { %1007 = shalt.err (!%p1004_p7)
}
  0x14   :  { %43 = dma.hbm_to_vmem [thread:$0]  %s1392_s2, 128, %s41_s18, [#allocation8]  }
  0x15   :  { %s1008_s14 = scalar_lea.hbm %s1391_s1, 128 }
  0x16   :  { %p1009_p8 = scmp.ne.s32.totalorder %s1391_s1, %s1008_s14  ;;  %p1012_p9 = scmp.lt.u32.totalorder %s1008_s14, %s1391_s1 }
  0x18   :  { %p1014_p10 = pnand %p1012_p9, %p1009_p8 }
  0x1a   :  { %1017 = shalt.err (!%p1014_p10)
}
  0x1b   :  { %s1018_s21 = scalar_lea.vmem %s31_s20, 128  ;;  %p1023_p12 = scmp.lt.s32.totalorder %s31_s20, %s31_s20 }
  0x1c   :  { %p1019_p11 = scmp.ne.s32.totalorder %s31_s20, %s1018_s21  ;;  %p1024_p13 = scmp.lt.s32.totalorder %s1018_s21, %s1018_s21 }
  0x1e   :  { %p1025_p0 = por %p1024_p13, %p1023_p12 }
  0x20   :  { %p1026_p1 = pnand %p1025_p0, %p1019_p11 }
  0x22   :  { %1029 = shalt.err (!%p1026_p1)
}
  0x23   :  { %33 = dma.hbm_to_vmem [thread:$0]  %s1391_s1, 128, %s31_s20, [#allocation5]  }
  0x24   :  { %s1152_s22 = smov [#allocation9]   ;;  %s1030_s26 = scalar_lea.hbm %s1395_s5, 8192 }
  0x25   :  { %s53_s23 = sshll.u32 %s1152_s22, 4  ;;  %p1031_p2 = scmp.ne.s32.totalorder %s1395_s5, %s1030_s26  ;;  %s54_s23 = int_to_ptr.vmem [resolvable:$true] %s53_s23 }
  0x26   :  { %p1034_p3 = scmp.lt.u32.totalorder %s1030_s26, %s1395_s5 }
  0x28   :  { %p1036_p4 = pnand %p1034_p3, %p1031_p2 }
  0x2a   :  { %1039 = shalt.err (!%p1036_p4)
}
  0x2b   :  { %s1040_s12 = scalar_lea.vmem %s54_s23, 8192  ;;  %p1045_p6 = scmp.lt.s32.totalorder %s54_s23, %s54_s23 }
  0x2c   :  { %p1041_p5 = scmp.ne.s32.totalorder %s54_s23, %s1040_s12  ;;  %p1046_p7 = scmp.lt.s32.totalorder %s1040_s12, %s1040_s12 }
  0x2e   :  { %p1047_p8 = por %p1046_p7, %p1045_p6 }
  0x30   :  { %p1048_p9 = pnand %p1047_p8, %p1041_p5 }
  0x32   :  { %1051 = shalt.err (!%p1048_p9)
}
  0x33   :  { %s1153_s1 = smov 512   ;;  %s1154_s20 = smov 32  }
  0x34   :  { %59 = dma.hbm_to_vmem [thread:$0]  %s1395_s5, 8192, %s54_s23, [#allocation8], %s1153_s1, %s1153_s1, %s1154_s20  }
  0x35   :  { %s1155_s15 = smov [#allocation10]   ;;  %s1052_s21 = scalar_lea.hbm %s1397_s7, 2048 }
  0x36   :  { %s67_s16 = sshll.u32 %s1155_s15, 4  ;;  %p1053_p10 = scmp.ne.s32.totalorder %s1397_s7, %s1052_s21  ;;  %s68_s16 = int_to_ptr.vmem [resolvable:$true] %s67_s16 }
  0x37   :  { %p1056_p11 = scmp.lt.u32.totalorder %s1052_s21, %s1397_s7 }
  0x39   :  { %p1058_p12 = pnand %p1056_p11, %p1053_p10 }
  0x3b   :  { %1061 = shalt.err (!%p1058_p12)
}
  0x3c   :  { %s1062_s25 = scalar_lea.vmem %s68_s16, 2048  ;;  %p1067_p0 = scmp.lt.s32.totalorder %s68_s16, %s68_s16 }
  0x3d   :  { %p1063_p13 = scmp.ne.s32.totalorder %s68_s16, %s1062_s25  ;;  %p1068_p1 = scmp.lt.s32.totalorder %s1062_s25, %s1062_s25 }
  0x3f   :  { %p1069_p2 = por %p1068_p1, %p1067_p0 }
  0x41   :  { %p1070_p3 = pnand %p1069_p2, %p1063_p13 }
  0x43   :  { %1073 = shalt.err (!%p1070_p3)
}
  0x44   :  { %s1156_s5 = smov 128   ;;  %s1157_s23 = smov 8  }
  0x45   :  { %73 = dma.hbm_to_vmem [thread:$0]  %s1397_s7, 2048, %s68_s16, [#allocation11], %s1156_s5, %s1156_s5, %s1157_s23  }
  0x46   :  { %1140 = dma.done.wait [#allocation5], 128  }
  0x47   :  { %1141 = vsyncadd [#allocation5], 4294967168 }
  0x48   :  { %1142 = dma.done.wait [#allocation8], 8320  }
  0x49   :  { %1143 = vsyncadd [#allocation8], 4294958976 }
  0x4a   :  { %1144 = dma.done.wait [#allocation11], 2048  }
  0x4b   :  { %1145 = vsyncadd [#allocation11], 4294965248  ;;  %v1158_v0 = vmov 0   ;;  %v1159_v1 = vmov 0.0|0.0   ;;  %v1160_v2 = vmov 0.0   ;;  %v96_v3 = vld [vmem:[%s1390_s0] sm:$0xff] }
  0x4c   :  { %965 = vset.pattern.permute.xlu0 %v1158_v0  ;;  %841 = vmatprep.subr.bf16.mxu0 %v1159_v1  ;;  %v105_v4 = vld [vmem:[%s1393_s3] sm:$0xff]  ;;  %v106_v5 = vld [vmem:[%s1393_s3 + $0x8] sm:$0xff]  ;;  %v107_v7 = vld [vmem:[%s1393_s3 + $0x10] sm:$0xff]  ;;  %vm1161_vm0 = vmmov 0   ;;  %vm116_vm1 = vcmask 1041408   ;;  %vm112_vm2 = vcmask 408576  }
  0x4d   :  { %327 = vmatprep.mubr.f32.mxu1 %v1160_v2  ;;  %100 = vperm.xlu0 %965, %v96_v3   ;;  %v842_v6 = vpack.c.bf16 %v106_v5, %v105_v4  ;;  %v108_v8 = vld [vmem:[%s1393_s3 + $0x18] sm:$0xff]  ;;  %v109_v10 = vld [vmem:[%s1393_s3 + $0x20] sm:$0xff]  ;;  %v110_v11 = vld [vmem:[%s1393_s3 + $0x28] sm:$0xff]  ;;  %v97_v4 = vlaneseq  ;;  %vm405_vm4 = vcmask 130048   ;;  %s1162_s15 = smov [#allocation13]  }
  0x4e   :  { %803 = vmatprep.mubr.msk.f32.mxu0 %vm1161_vm0, %v1160_v2  ;;  %v845_v9 = vpack.c.bf16 %v108_v8, %v107_v7  ;;  %v200_v12 = vld [vmem:[#allocation9 + $0x8] sm:$0xff]  ;;  %v199_v15 = vld [vmem:[#allocation9] sm:$0xff]  ;;  %v848_v17 = vpack.c.bf16 %v110_v11, %v109_v10  ;;  %v202_v19 = vld [vmem:[#allocation9 + $0x18] sm:$0xff]  ;;  %s727_s0 = sshll.u32 %s1162_s15, 4  ;;  %s728_s0 = int_to_ptr.vmem [resolvable:$true] %s727_s0 }
  0x4f   :  { %843 = vmatpush3.bf16.msra.mxu0 %v842_v6  ;;  %v204_v13 = vld [vmem:[#allocation9 + $0x28] sm:$0xff]  ;;  %v203_v16 = vld [vmem:[#allocation9 + $0x20] sm:$0xff]  ;;  %v206_v22 = vld [vmem:[#allocation9 + $0x38] sm:$0xff]  ;;  %v98_v5 = vand.u32 127, %v97_v4  ;;  %s1074_s16 = scalar_lea.vmem %s728_s0, 128  ;;  %p1079_p5 = scmp.lt.s32.totalorder %s728_s0, %s728_s0 }
  0x50   :  { %844 = vmatprep.subr.bf16.mxu0 %v1159_v1  ;;  %v850_v14 = vpack.c.bf16 %v204_v13, %v200_v12  ;;  %v852_v18 = vpack.c.bf16 %v203_v16, %v199_v15  ;;  %v208_v20 = vld [vmem:[#allocation9 + $0x48] sm:$0xff]  ;;  %v207_v24 = vld [vmem:[#allocation9 + $0x40] sm:$0xff]  ;;  %v882_v28 = vpack.c.bf16 %v206_v22, %v202_v19  ;;  %v1305_v3 = vld [vmem:[#allocation4] sm:$0xff]  ;;  %p1075_p4 = scmp.ne.s32.totalorder %s728_s0, %s1074_s16  ;;  %p1080_p6 = scmp.lt.s32.totalorder %s1074_s16, %s1074_s16 }
  0x51   :  { %v212_v21 = vld [vmem:[#allocation9 + $0x68] sm:$0xff]  ;;  %v211_v25 = vld [vmem:[#allocation9 + $0x60] sm:$0xff]  ;;  %v201_v6 = vld [vmem:[#allocation9 + $0x10] sm:$0xff] }
  0x52   :  { %851 = vmatprep.subr.bf16.mxu1 %v850_v14  ;;  %v854_v23 = vpack.c.bf16 %v212_v21, %v208_v20  ;;  %v856_v26 = vpack.c.bf16 %v211_v25, %v207_v24  ;;  %v111_v27 = vld [vmem:[%s1393_s3 + $0x30] sm:$0x3]  ;;  %v216_v29 = vld [vmem:[#allocation9 + $0x88] sm:$0xff]  ;;  %v205_v7 = vld [vmem:[#allocation9 + $0x30] sm:$0xff]  ;;  %p1081_p7 = por %p1080_p6, %p1079_p5 }
  0x53   :  { %846 = vmatpush3.bf16.msra.mxu0 %v845_v9  ;;  %853 = vmatpush1.bf16.msra.mxu1 %v852_v18  ;;  %v220_v30 = vld [vmem:[#allocation9 + $0xa8] sm:$0xff]  ;;  %v215_v32 = vld [vmem:[#allocation9 + $0x80] sm:$0xff]  ;;  %v210_v8 = vld [vmem:[#allocation9 + $0x58] sm:$0xff]  ;;  %v884_v11 = vpack.c.bf16 %v205_v7, %v201_v6 }
  0x54   :  { %847 = vmatprep.subr.bf16.mxu0 %v1159_v1  ;;  %855 = vmatprep.subr.bf16.mxu1 %v854_v23  ;;  %v858_v31 = vpack.c.bf16 %v220_v30, %v216_v29  ;;  %v219_v33 = vld [vmem:[#allocation9 + $0xa0] sm:$0xff]  ;;  %v224_v35 = vld [vmem:[#allocation9 + $0xc8] sm:$0xff]  ;;  %v214_v9 = vld [vmem:[#allocation9 + $0x78] sm:$0xff]  ;;  %p1082_p8 = pnand %p1081_p7, %p1075_p4 }
  0x55   :  { %v860_v34 = vpack.c.bf16 %v219_v33, %v215_v32  ;;  %v228_v36 = vld [vmem:[#allocation9 + $0xe8] sm:$0xff]  ;;  %v223_v38 = vld [vmem:[#allocation9 + $0xc0] sm:$0xff]  ;;  %v886_v12 = vpack.c.bf16 %v214_v9, %v210_v8  ;;  %v209_v13 = vld [vmem:[#allocation9 + $0x50] sm:$0xff] }
  0x56   :  { %v862_v37 = vpack.c.bf16 %v228_v36, %v224_v35  ;;  %v227_v39 = vld [vmem:[#allocation9 + $0xe0] sm:$0xff]  ;;  %v232_v41 = vld [vmem:[#allocation9 + $0x108] sm:$0xff]  ;;  %v213_v14 = vld [vmem:[#allocation9 + $0x70] sm:$0xff] }
  0x57   :  { %849 = vmatpush3.bf16.msra.mxu0 %v848_v17  ;;  %857 = vmatpush1.bf16.msra.mxu1 %v856_v26  ;;  %v864_v40 = vpack.c.bf16 %v227_v39, %v223_v38  ;;  %v236_v42 = vld [vmem:[#allocation9 + $0x128] sm:$0xff]  ;;  %v231_v44 = vld [vmem:[#allocation9 + $0x100] sm:$0xff]  ;;  %v218_v16 = vld [vmem:[#allocation9 + $0x98] sm:$0xff]  ;;  %v888_v18 = vpack.c.bf16 %v213_v14, %v209_v13 }
  0x58   :  { %801 = vmatprep.subr.mxu0 %v1160_v2  ;;  %859 = vmatprep.subr.bf16.mxu1 %v858_v31  ;;  %v866_v43 = vpack.c.bf16 %v236_v42, %v232_v41  ;;  %v235_v45 = vld [vmem:[#allocation9 + $0x120] sm:$0xff]  ;;  %v240_v47 = vld [vmem:[#allocation9 + $0x148] sm:$0xff]  ;;  %v222_v17 = vld [vmem:[#allocation9 + $0xb8] sm:$0xff] }
  0x59   :  { %v868_v46 = vpack.c.bf16 %v235_v45, %v231_v44  ;;  %v244_v48 = vld [vmem:[#allocation9 + $0x168] sm:$0xff]  ;;  %v239_v50 = vld [vmem:[#allocation9 + $0x140] sm:$0xff]  ;;  %v890_v19 = vpack.c.bf16 %v222_v17, %v218_v16  ;;  %v217_v20 = vld [vmem:[#allocation9 + $0x90] sm:$0xff] }
  0x5a   :  { %v870_v49 = vpack.c.bf16 %v244_v48, %v240_v47  ;;  %v243_v51 = vld [vmem:[#allocation9 + $0x160] sm:$0xff]  ;;  %v248_v53 = vld [vmem:[#allocation9 + $0x188] sm:$0xff]  ;;  %v221_v21 = vld [vmem:[#allocation9 + $0xb0] sm:$0xff] }
  0x5b   :  { %802 = vmatpush3.msk.msra.mxu0 %vm116_vm1, %v111_v27  ;;  %861 = vmatpush1.bf16.msra.mxu1 %v860_v34  ;;  %v872_v52 = vpack.c.bf16 %v243_v51, %v239_v50  ;;  %v252_v54 = vld [vmem:[#allocation9 + $0x1a8] sm:$0xff]  ;;  %v247_v56 = vld [vmem:[#allocation9 + $0x180] sm:$0xff]  ;;  %v226_v22 = vld [vmem:[#allocation9 + $0xd8] sm:$0xff]  ;;  %v892_v24 = vpack.c.bf16 %v221_v21, %v217_v20 }
  0x5c   :  { %883 = vmatprep.subr.bf16.mxu0 %v882_v28  ;;  %863 = vmatprep.subr.bf16.mxu1 %v862_v37  ;;  %v874_v55 = vpack.c.bf16 %v252_v54, %v248_v53  ;;  %v251_v57 = vld [vmem:[#allocation9 + $0x1a0] sm:$0xff]  ;;  %v256_v59 = vld [vmem:[#allocation9 + $0x1c8] sm:$0xff]  ;;  %v230_v23 = vld [vmem:[#allocation9 + $0xf8] sm:$0xff] }
  0x5d   :  { %v876_v58 = vpack.c.bf16 %v251_v57, %v247_v56  ;;  %v260_v60 = vld [vmem:[#allocation9 + $0x1e8] sm:$0xff]  ;;  %v255_v62 = vld [vmem:[#allocation9 + $0x1c0] sm:$0xff]  ;;  %v894_v25 = vpack.c.bf16 %v230_v23, %v226_v22  ;;  %v225_v26 = vld [vmem:[#allocation9 + $0xd0] sm:$0xff] }
  0x5e   :  { %v878_v61 = vpack.c.bf16 %v260_v60, %v256_v59  ;;  %v259_v63 = vld [vmem:[#allocation9 + $0x1e0] sm:$0xff]  ;;  %v229_v27 = vld [vmem:[#allocation9 + $0xf0] sm:$0xff]  ;;  %v234_v28 = vld [vmem:[#allocation9 + $0x118] sm:$0xff] }
  0x5f   :  { %865 = vmatpush1.bf16.msra.mxu1 %v864_v40  ;;  %v880_v0 = vpack.c.bf16 %v259_v63, %v255_v62  ;;  %v238_v29 = vld [vmem:[#allocation9 + $0x138] sm:$0xff]  ;;  %v896_v30 = vpack.c.bf16 %v229_v27, %v225_v26  ;;  %v233_v32 = vld [vmem:[#allocation9 + $0x110] sm:$0xff]  ;;  %v193_v59 = vld [vmem:[%s1394_s4 + $0x18] sm:$0xff] }
  0x60   :  { %867 = vmatprep.subr.bf16.mxu1 %v866_v43  ;;  %v898_v31 = vpack.c.bf16 %v238_v29, %v234_v28  ;;  %v237_v33 = vld [vmem:[#allocation9 + $0x130] sm:$0xff]  ;;  %v242_v34 = vld [vmem:[#allocation9 + $0x158] sm:$0xff]  ;;  %v197_v60 = vld [vmem:[%s1394_s4 + $0x38] sm:$0xff] }
  0x61   :  { %v246_v35 = vld [vmem:[#allocation9 + $0x178] sm:$0xff]  ;;  %v900_v36 = vpack.c.bf16 %v237_v33, %v233_v32  ;;  %v241_v38 = vld [vmem:[#allocation9 + $0x150] sm:$0xff]  ;;  %v602_v8 = vld [vmem:[#allocation10] sm:$0xff] }
  0x62   :  { %v902_v37 = vpack.c.bf16 %v246_v35, %v242_v34  ;;  %v245_v39 = vld [vmem:[#allocation9 + $0x170] sm:$0xff]  ;;  %v250_v40 = vld [vmem:[#allocation9 + $0x198] sm:$0xff]  ;;  %v603_v9 = vld [vmem:[#allocation10 + $0x8] sm:$0xff] }
  0x63   :  { %869 = vmatpush1.bf16.msra.mxu1 %v868_v46  ;;  %v254_v41 = vld [vmem:[#allocation9 + $0x1b8] sm:$0xff]  ;;  %v904_v42 = vpack.c.bf16 %v245_v39, %v241_v38  ;;  %v249_v44 = vld [vmem:[#allocation9 + $0x190] sm:$0xff]  ;;  %v606_v14 = vld [vmem:[#allocation10 + $0x20] sm:$0xff] }
  0x64   :  { %871 = vmatprep.subr.bf16.mxu1 %v870_v49  ;;  %v906_v43 = vpack.c.bf16 %v254_v41, %v250_v40  ;;  %v253_v45 = vld [vmem:[#allocation9 + $0x1b0] sm:$0xff]  ;;  %v258_v46 = vld [vmem:[#allocation9 + $0x1d8] sm:$0xff]  ;;  %v611_v20 = vld [vmem:[#allocation10 + $0x48] sm:$0xff] }
  0x65   :  { %v262_v47 = vld [vmem:[#allocation9 + $0x1f8] sm:$0xff]  ;;  %v908_v48 = vpack.c.bf16 %v253_v45, %v249_v44  ;;  %v257_v50 = vld [vmem:[#allocation9 + $0x1d0] sm:$0xff]  ;;  %v615_v26 = vld [vmem:[#allocation10 + $0x68] sm:$0xff] }
  0x66   :  { %v910_v49 = vpack.c.bf16 %v262_v47, %v258_v46  ;;  %v261_v51 = vld [vmem:[#allocation9 + $0x1f0] sm:$0xff]  ;;  %v195_v53 = vld [vmem:[%s1394_s4 + $0x28] sm:$0xff] }
  0x67   :  { %873 = vmatpush1.bf16.msra.mxu1 %v872_v52  ;;  %v191_v52 = vld [vmem:[%s1394_s4 + $0x8] sm:$0xff]  ;;  %v912_v54 = vpack.c.bf16 %v261_v51, %v257_v50  ;;  %v190_v56 = vld [vmem:[%s1394_s4] sm:$0xff] }
  0x68   :  { %875 = vmatprep.subr.bf16.mxu1 %v874_v55  ;;  %v914_v55 = vpack.c.bf16 %v195_v53, %v191_v52  ;;  %v194_v57 = vld [vmem:[%s1394_s4 + $0x20] sm:$0xff]  ;;  %v609_v17 = vld [vmem:[#allocation10 + $0x38] sm:$0xff] }
  0x69   :  { %v612_v22 = vld [vmem:[#allocation10 + $0x50] sm:$0xff]  ;;  %v613_v23 = vld [vmem:[#allocation10 + $0x58] sm:$0xff] }
  0x6a   :  { %v616_v28 = vld [vmem:[#allocation10 + $0x70] sm:$0xff]  ;;  %v617_v29 = vld [vmem:[#allocation10 + $0x78] sm:$0xff] }
  0x6b   :  { %877 = vmatpush1.bf16.msra.mxu1 %v876_v58  ;;  %v916_v58 = vpack.c.bf16 %v194_v57, %v190_v56  ;;  %v551_v33 = vld [vmem:[%s1396_s6] sm:$0xf] }
  0x6c   :  { %879 = vmatprep.subr.bf16.mxu1 %v878_v61  ;;  %v918_v61 = vpack.c.bf16 %v197_v60, %v193_v59 }
  0x6f   :  { %881 = vmatpush1.bf16.msra.mxu1 %v880_v0  ;;  %v192_v0 = vld [vmem:[%s1394_s4 + $0x10] sm:$0xff] }
  0x70   :  { %922 = vmatprep.subr.bf16.mxu1 %v1159_v1 }
  0x72   :  { %328 = vmatmul.mubr.f32.vlgmr.msra.gmra.mrb[0].mxu1 %v1305_v3 }
  0x73   :  { %838 = vmatprep.mubr.msk.f32.mxu1 %vm1161_vm0, %v1160_v2 }
  0xcc   :  { %v101_v10 = vpop.permute.xlu0 %100 }
  0xcd   :  { %vm102_vm3 = vcmp.eq.s32.totalorder %v98_v5, %v101_v10  ;;  %v923_v10 = vpack.c.bf16 %v603_v9, %v602_v8 }
  0xce   :  { %v755_v15 = vsel %vm102_vm3, 1.0, %v1160_v2 }
  0xcf   :  { %804 = vmatmul.mubr.msk.f32.vlgmr.msra.gmra.mrb[0].mxu0 %vm112_vm2, %v755_v15  ;;  %924 = vmatpush3.bf16.msra.mxu1 %v923_v10  ;;  %v607_v15 = vld [vmem:[#allocation10 + $0x28] sm:$0xff] }
  0xd0   :  { %885 = vmatpush1.bf16.msra.mxu0 %v884_v11  ;;  %398 = vmatprep.mubr.f32.mxu0 %v1160_v2  ;;  %v604_v11 = vld [vmem:[#allocation10 + $0x10] sm:$0xff]  ;;  %v929_v16 = vpack.c.bf16 %v607_v15, %v606_v14 }
  0xd1   :  { %887 = vmatprep.subr.bf16.mxu0 %v886_v12  ;;  %925 = vmatprep.subr.bf16.mxu1 %v1159_v1  ;;  %v605_v12 = vld [vmem:[#allocation10 + $0x18] sm:$0xff] }
  0xd2   :  { %v926_v13 = vpack.c.bf16 %v605_v12, %v604_v11 }
  0xd4   :  { %889 = vmatpush1.bf16.msra.mxu0 %v888_v18  ;;  %927 = vmatpush3.bf16.msra.mxu1 %v926_v13 }
  0xd5   :  { %891 = vmatprep.subr.bf16.mxu0 %v890_v19  ;;  %928 = vmatprep.subr.bf16.mxu1 %v1159_v1  ;;  %v610_v19 = vld [vmem:[#allocation10 + $0x40] sm:$0xff] }
  0xd6   :  { %v935_v21 = vpack.c.bf16 %v611_v20, %v610_v19 }
  0xd8   :  { %893 = vmatpush1.bf16.msra.mxu0 %v892_v24  ;;  %930 = vmatpush3.bf16.msra.mxu1 %v929_v16  ;;  %v938_v24 = vpack.c.bf16 %v613_v23, %v612_v22 }
  0xd9   :  { %895 = vmatprep.subr.bf16.mxu0 %v894_v25  ;;  %931 = vmatprep.subr.bf16.mxu1 %v1159_v1  ;;  %v614_v25 = vld [vmem:[#allocation10 + $0x60] sm:$0xff] }
  0xda   :  { %v941_v27 = vpack.c.bf16 %v615_v26, %v614_v25 }
  0xdc   :  { %897 = vmatpush1.bf16.msra.mxu0 %v896_v30  ;;  %v944_v30 = vpack.c.bf16 %v617_v29, %v616_v28 }
  0xdd   :  { %899 = vmatprep.subr.bf16.mxu0 %v898_v31  ;;  %v554_v31 = vshrl.u32 %v97_v4, 7 }
  0xdf   :  { %v555_v32 = vsub.s32 0, %v554_v31  ;;  %v559_v34 = vsub.s32 1, %v554_v31  ;;  %v563_v35 = vsub.s32 2, %v554_v31 }
  0xe0   :  { %901 = vmatpush1.bf16.msra.mxu0 %v900_v36  ;;  %v567_v36 = vsub.s32 3, %v554_v31 }
  0xe1   :  { %903 = vmatprep.subr.bf16.mxu0 %v902_v37  ;;  %v556_v37 = vrot.slane %v551_v33, %v555_v32  ;;  %v560_v39 = vrot.slane %v551_v33, %v559_v34 }
  0xe2   :  { %v568_v44 = vrot.slane %v551_v33, %v567_v36 }
  0xe4   :  { %905 = vmatpush1.bf16.msra.mxu0 %v904_v42  ;;  %v564_v42 = vrot.slane %v551_v33, %v563_v35 }
  0xe5   :  { %907 = vmatprep.subr.bf16.mxu0 %v906_v43 }
  0xe8   :  { %909 = vmatpush1.bf16.msra.mxu0 %v908_v48 }
  0xe9   :  { %911 = vmatprep.subr.bf16.mxu0 %v910_v49 }
  0xec   :  { %913 = vmatpush1.bf16.msra.mxu0 %v912_v54 }
  0xed   :  { %915 = vmatprep.subr.bf16.mxu0 %v914_v55 }
  0xef   :  { %399 = vmatmul.mubr.f32.vlgmr.msra.gmra.mrb[2].mxu0 %v1305_v3  ;;  %v196_v3 = vld [vmem:[%s1394_s4 + $0x30] sm:$0xff] }
  0xf0   :  { %917 = vmatpush1.bf16.msra.mxu0 %v916_v58  ;;  %473 = vmatprep.mubr.f32.mxu0 %v1160_v2  ;;  %v920_v5 = vpack.c.bf16 %v196_v3, %v192_v0  ;;  %v94_v58 = vld [vmem:[#allocation7] sm:$0xff] }
  0xf1   :  { %919 = vmatprep.subr.bf16.mxu0 %v918_v61 }
 0x145   :  { %v329_v62 = vpop.f32.mrb[0].mxu1 }
 0x146   :  { %v331_v63 = vpop.f32.mrb[1].mxu1 }
 0x1a2   :  { %v186_v6 = vpop.f32.mrb[0].mxu0 }
 0x1a3   :  { %v805_v7 = vpop.f32.mrb[1].mxu0  ;;  %758 = vmatmul.mubr.msk.f32.vlgmr.msra.gmra.mrb[4].mxu0 %vm405_vm4, %v186_v6 }
 0x1a4   :  { %921 = vmatpush1.bf16.msra.mxu0 %v920_v5  ;;  %544 = vmatprep.mubr.f32.mxu0 %v1160_v2  ;;  %v608_v2 = vld [vmem:[#allocation10 + $0x30] sm:$0xff] }
 0x1a5   :  { %v932_v18 = vpack.c.bf16 %v609_v17, %v608_v2  ;;  %v763_v7 = vld [vmem:[%s1398_s8] ss:$0 sm:$0xff] }
 0x1a7   :  { %759 = vmatmul.mubr.msk.f32.vlgmr.msra.gmra.mrb[2].mxu0 %vm405_vm4, %v186_v6  ;;  %933 = vmatpush3.bf16.msra.mxu1 %v932_v18 }
 0x1a8   :  { %934 = vmatprep.subr.bf16.mxu1 %v1159_v1 }
 0x1ab   :  { %936 = vmatpush3.bf16.msra.mxu1 %v935_v21 }
 0x1ac   :  { %937 = vmatprep.subr.bf16.mxu1 %v1159_v1 }
 0x1af   :  { %939 = vmatpush3.bf16.msra.mxu1 %v938_v24 }
 0x1b0   :  { %940 = vmatprep.subr.bf16.mxu1 %v1159_v1 }
 0x1b3   :  { %942 = vmatpush3.bf16.msra.mxu1 %v941_v27 }
 0x1b4   :  { %943 = vmatprep.subr.bf16.mxu1 %v1159_v1 }
 0x1b7   :  { %945 = vmatpush3.bf16.msra.mxu1 %v944_v30 }
 0x276   :  { %v475_v38 = vpop.f32.mrb[4].mxu0 }
 0x277   :  { %v476_v40 = vadd.f32 %v475_v38, %v329_v62  ;;  %v477_v41 = vpop.f32.mrb[5].mxu0 }
 0x278   :  { %v478_v43 = vadd.f32 %v477_v41, %v331_v63 }
 0x279   :  { %v573_v1 = vadd.f32 %v556_v37, %v476_v40 }
 0x27a   :  { %v574_v45 = vadd.f32 %v560_v39, %v478_v43  ;;  %v546_v46 = vpop.f32.mrb[2].mxu0 }
 0x27b   :  { %v760_v4 = vmul.f32 -1.442695, %v573_v1  ;;  %v575_v47 = vadd.f32 %v564_v42, %v546_v46  ;;  %v548_v48 = vpop.f32.mrb[3].mxu0 }
 0x27c   :  { %v761_v49 = vmul.f32 -1.442695, %v574_v45  ;;  %v576_v50 = vadd.f32 %v568_v44, %v548_v48 }
 0x27d   :  { %966 = vpow2.f32 %v760_v4 }
 0x27e   :  { %968 = vpow2.f32 %v761_v49  ;;  %v762_v51 = vmul.f32 -1.442695, %v576_v50 }
 0x280   :  { %970 = vpow2.f32 %v762_v51 }
 0x281   :  { %972 = vtanh.f32 %v575_v47 }
 0x287   :  { %v967_v52 = vpop.eup %966 }
 0x288   :  { %v969_v53 = vpop.eup %968  ;;  %v580_v54 = vadd.f32 1.0, %v967_v52 }
 0x289   :  { %v586_v55 = vadd.f32 1.0, %v969_v53 }
 0x28a   :  { %974 = vrcp.f32 %v580_v54  ;;  %v971_v56 = vpop.eup %970 }
 0x28b   :  { %976 = vrcp.f32 %v586_v55  ;;  %v973_v57 = vpop.eup %972  ;;  %v593_v62 = vadd.f32 1.0, %v971_v56 }
 0x28d   :  { %978 = vrcp.f32 %v593_v62 }
 0x294   :  { %v975_v59 = vpop.eup %974 }
 0x295   :  { %v977_v60 = vpop.eup %976  ;;  %v598_v61 = vmul.f32 %v975_v59, %v973_v57 }
 0x296   :  { %v597_v63 = vmul.f32 %v977_v60, %v94_v58 }
 0x297   :  { %v979_v3 = vpop.eup %978 }
 0x298   :  { %v599_v0 = vadd.f32 %v598_v61, %v597_v63 }
 0x29a   :  { %980 = vtanh.f32 %v599_v0  ;;  %710 = vst [vmem:[#allocation15] sm:$0xff] %v599_v0 }
 0x2a4   :  { %v981_v5 = vpop.eup %980 }
 0x2a5   :  { %v601_v6 = vmul.f32 %v981_v5, %v979_v3 }
 0x2a7   :  { %839 = vmatmul.mubr.f32.vlgmr.msra.gmra.mrb[2].mxu1 %v601_v6  ;;  %709 = vst [vmem:[#allocation13] sm:$0xff] %v601_v6 }
 0x37a   :  { %v691_v8 = vpop.f32.mrb[2].mxu1 }
 0x37b   :  { %v692_v9 = vadd.f32 %v763_v7, %v691_v8  ;;  %v840_v10 = vpop.f32.mrb[3].mxu1 }
 0x37d   :  { %695 = vmax.xlane.f32.xlu0 %v692_v9 }
 0x40a   :  { %v696_v11 = vpop.xlane.xlu0 %695 }
 0x40b   :  { %v697_v12 = vsub.f32 %v692_v9, %v696_v11 }
 0x40d   :  { %v698_v13 = vmul.f32 1.442695, %v697_v12 }
 0x40f   :  { %982 = vpow2.f32 %v698_v13 }
 0x419   :  { %v983_v14 = vpop.eup %982 }
 0x41a   :  { %700 = vadd.xlane.f32.xlu1 %v983_v14 }
 0x41b   :  { %1085 = shalt.err (!%p1082_p8)
}
 0x41c   :  { %s1086_s19 = scalar_lea.hbm %s1400_s10, 128 }
 0x41d   :  { %p1087_p9 = scmp.ne.s32.totalorder %s1400_s10, %s1086_s19  ;;  %p1090_p10 = scmp.lt.u32.totalorder %s1086_s19, %s1400_s10 }
 0x41f   :  { %p1092_p11 = pnand %p1090_p10, %p1087_p9 }
 0x421   :  { %1095 = shalt.err (!%p1092_p11)
}
 0x422   :  { %730 = dma.vmem_to_hbm [thread:$0]  %s728_s0, 128, %s1400_s10, [#allocation14]  }
 0x423   :  { %s1163_s25 = smov [#allocation15]  }
 0x424   :  { %s737_s5 = sshll.u32 %s1163_s25, 4  ;;  %s738_s5 = int_to_ptr.vmem [resolvable:$true] %s737_s5 }
 0x425   :  { %s1096_s23 = scalar_lea.vmem %s738_s5, 128  ;;  %p1101_p13 = scmp.lt.s32.totalorder %s738_s5, %s738_s5 }
 0x426   :  { %p1097_p12 = scmp.ne.s32.totalorder %s738_s5, %s1096_s23  ;;  %p1102_p0 = scmp.lt.s32.totalorder %s1096_s23, %s1096_s23 }
 0x428   :  { %p1103_p1 = por %p1102_p0, %p1101_p13 }
 0x42a   :  { %p1104_p2 = pnand %p1103_p1, %p1097_p12 }
 0x42c   :  { %1107 = shalt.err (!%p1104_p2)
}
 0x42d   :  { %s1108_s28 = scalar_lea.hbm %s1401_s11, 128 }
 0x42e   :  { %p1109_p3 = scmp.ne.s32.totalorder %s1401_s11, %s1108_s28  ;;  %p1112_p4 = scmp.lt.u32.totalorder %s1108_s28, %s1401_s11 }
 0x430   :  { %p1114_p5 = pnand %p1112_p4, %p1109_p3 }
 0x432   :  { %1117 = shalt.err (!%p1114_p5)
}
 0x433   :  { %740 = dma.vmem_to_hbm [thread:$0]  %s738_s5, 128, %s1401_s11, [#allocation14]  }
 0x434   :  { %s1164_s20 = smov [#allocation12]  }
 0x435   :  { %s717_s4 = sshll.u32 %s1164_s20, 4  ;;  %s718_s4 = int_to_ptr.vmem [resolvable:$true] %s717_s4 }
 0x436   :  { %s1118_s13 = scalar_lea.vmem %s718_s4, 128  ;;  %p1123_p7 = scmp.lt.s32.totalorder %s718_s4, %s718_s4 }
 0x437   :  { %p1119_p6 = scmp.ne.s32.totalorder %s718_s4, %s1118_s13  ;;  %p1124_p8 = scmp.lt.s32.totalorder %s1118_s13, %s1118_s13 }
 0x439   :  { %p1125_p9 = por %p1124_p8, %p1123_p7 }
 0x43b   :  { %p1126_p10 = pnand %p1125_p9, %p1119_p6 }
 0x4a7   :  { %v701_v15 = vpop.xlane.xlu1 %700 }
 0x4a8   :  { %984 = vlog2.f32 %v701_v15 }
 0x4b2   :  { %v985_v16 = vpop.eup %984 }
 0x4b3   :  { %v703_v2 = vmul.f32 0.6931472, %v985_v16 }
 0x4b5   :  { %v704_v17 = vadd.f32 %v703_v2, %v696_v11 }
 0x4b7   :  { %v705_v18 = vsub.f32 %v692_v9, %v704_v17 }
 0x4b9   :  { %706 = vst [vmem:[#allocation12] sm:$0xff] %v705_v18 }
 0x4ba   :  { %1129 = shalt.err (!%p1126_p10)
}
 0x4bb   :  { %s1130_s11 = scalar_lea.hbm %s1399_s9, 128 }
 0x4bc   :  { %p1131_p11 = scmp.ne.s32.totalorder %s1399_s9, %s1130_s11  ;;  %p1134_p12 = scmp.lt.u32.totalorder %s1130_s11, %s1399_s9 }
 0x4be   :  { %p1136_p13 = pnand %p1134_p12, %p1131_p11 }
 0x4c0   :  { %1139 = shalt.err (!%p1136_p13)
}
 0x4c1   :  { %720 = dma.vmem_to_hbm [thread:$0]  %s718_s4, 128, %s1399_s9, [#allocation6]  }
 0x4c2   :  { %1146 = dma.done.wait [#allocation6], 128  }
 0x4c3   :  { %1147 = vsyncadd [#allocation6], 4294967168 }
 0x4c4   :  { %1148 = dma.done.wait [#allocation14], 256  }
 0x4c5   :  { %1149 = vsyncadd [#allocation14], 4294967040 }
 0x4c6   :  { %750 = vsyncpa [#allocation5], 1 }
 0x4c7   :  { %751 = vsyncpa [#allocation8], 1 }
 0x4c8   :  { %752 = vsyncpa [#allocation11], 1 }
 0x4c9   :  { %753 = vsyncpa [#allocation6], 1 }
 0x4ca   :  { %754 = vsyncpa [#allocation14], 1 }

</bundles_post_ra>
